<compile_context>
chip_gen: v7x
topology: tpu7x:2x2x1
jax: 0.10.0
libtpu: 0.0.40
codegen_flags: <defaults>
</compile_context>

<pallas_src>
import jax
import jax.numpy as jnp
from jax.experimental import pallas as pl
from jax.experimental.pallas import tpu as pltpu

MASK_TINY = 1e-38   # smallest "safe" f32 constant (1e-45 flushes to 0 on TPU)
NEG_FILL = -1e9     # pad value for event-type logit columns >= num_event_type


def _nll(x, ids_f):
    """x: (..., C) f32 logits, ids_f: (..., 1) f32 integral target ids.
    Returns logsumexp(x, -1) - x[ids], shape (..., 1)."""
    m = jnp.max(x, axis=-1, keepdims=True)
    lse = m + jnp.log(jnp.sum(jnp.exp(x - m), axis=-1, keepdims=True))
    iota = jax.lax.broadcasted_iota(jnp.int32, x.shape, x.ndim - 1)
    tgt = ids_f.astype(jnp.int32)          # ids are small integers -> exact
    gathered = jnp.sum(jnp.where(iota == tgt, x, 0.0), axis=-1, keepdims=True)
    return lse - gathered


def _uwl_kernel(head_ref,      # (4, B, C) f32: [type|src|dst logits, node_mask]
                label_ref,     # (L, B, W) f32
                side_ref,      # (11+2L, B, 1) f32
                out_ref):      # (1, B) f32
    L = label_ref.shape[0]
    B = out_ref.shape[1]

    sb = side_ref[...]                     # (11+2L, B, 1)
    ids3 = sb[0:3]                         # (3,B,1) type/src/dst target ids
    masks = sb[3:7]                        # (4,B,1) event/src/dst/label masks
    label_ids = sb[7:7 + L]                # (L,B,1)
    label_wmask = sb[7 + L:7 + 2 * L]      # (L,B,1)
    lv = sb[7 + 2 * L:11 + 2 * L]          # (4,B,1) log_var (uniform over B)

    head = head_ref[...]                   # (4,B,C)
    logits3 = head[0:3]                    # (3,B,C)
    node_mask = head[3]                    # (B,C)

    # masked_log_softmax additive term; applied to src/dst planes only
    # (plane 0 is the event-type head, already padded with NEG_FILL).
    mask_add = jnp.log(node_mask + MASK_TINY)                           # (B,C)
    mask_add3 = jnp.broadcast_to(mask_add[None, :, :], logits3.shape)   # (3,B,C)
    plane = jax.lax.broadcasted_iota(jnp.int32, logits3.shape, 0)
    x3 = logits3 + jnp.where(plane > 0, mask_add3, 0.0)

    # one fused NLL pass over the three single-target heads
    nll3 = _nll(x3, ids3)                                               # (3,B,1)
    type_loss = nll3[0] * masks[0]                                      # (B,1)
    src_loss = nll3[1] * masks[1]
    dst_loss = nll3[2] * masks[2]

    # label head: per-token CE, masked, summed over label length
    per_tok = _nll(label_ref[...], label_ids)                           # (L,B,1)
    label_loss = jnp.sum(per_tok * label_wmask, axis=0) * masks[3]      # (B,1)

    # Kendall / Liebel uncertainty weighting
    prec = jnp.exp(-lv)                                                 # (4,B,1)
    # numerically stable softplus: max(x,0) + log1p(exp(-|x|))
    reg = jnp.maximum(lv, 0.0) + jnp.log1p(jnp.exp(-jnp.abs(lv)))       # (4,B,1)
    reg_sum = reg[0] + reg[1] + reg[2] + reg[3]                         # (B,1)

    total = (type_loss * prec[0] + src_loss * prec[1]
             + dst_loss * prec[2] + label_loss * prec[3] + reg_sum)     # (B,1)

    # (B,1) -> (1,B) lane-major store without an in-kernel transpose:
    # diagonal select on a (B,B) tile followed by a sublane reduce.
    row = jax.lax.broadcasted_iota(jnp.int32, (B, B), 0)
    col = jax.lax.broadcasted_iota(jnp.int32, (B, B), 1)
    diag = jnp.where(row == col, jnp.broadcast_to(total, (B, B)), 0.0)
    out_ref[...] = jnp.sum(diag, axis=0, keepdims=True)                 # (1,B)


@jax.jit
def uncertainty_weighted_loss(log_var,
                              event_type_logits, groundtruth_event_type_ids,
                              event_src_logits, groundtruth_event_src_ids,
                              event_dst_logits, groundtruth_event_dst_ids,
                              batch_node_mask,
                              event_label_logits,
                              groundtruth_event_label_word_ids,
                              groundtruth_event_label_word_mask,
                              groundtruth_event_mask,
                              groundtruth_event_src_mask,
                              groundtruth_event_dst_mask,
                              groundtruth_event_label_mask):
    f32 = jnp.float32
    B, T = event_type_logits.shape
    _, N = event_src_logits.shape
    _, L, W = event_label_logits.shape
    C = max(T, N)

    # ---- input packing: layout plumbing only, fused into the input DMAs
    # via allow_input_fusion (this wrapper is jitted).
    type_pad = jnp.pad(event_type_logits.astype(f32), ((0, 0), (0, C - T)),
                       constant_values=NEG_FILL)
    src_pad = jnp.pad(event_src_logits.astype(f32), ((0, 0), (0, C - N)))
    dst_pad = jnp.pad(event_dst_logits.astype(f32), ((0, 0), (0, C - N)))
    mask_pad = jnp.pad(batch_node_mask.astype(f32), ((0, 0), (0, C - N)))
    head = jnp.stack([type_pad, src_pad, dst_pad, mask_pad], axis=0)      # (4,B,C)

    label_logits_t = jnp.transpose(event_label_logits, (1, 0, 2)).astype(f32)  # (L,B,W)

    sideband = jnp.concatenate([
        groundtruth_event_type_ids.astype(f32)[None],
        groundtruth_event_src_ids.astype(f32)[None],
        groundtruth_event_dst_ids.astype(f32)[None],
        groundtruth_event_mask.astype(f32)[None],
        groundtruth_event_src_mask.astype(f32)[None],
        groundtruth_event_dst_mask.astype(f32)[None],
        groundtruth_event_label_mask.astype(f32)[None],
        jnp.transpose(groundtruth_event_label_word_ids, (1, 0)).astype(f32),
        jnp.transpose(groundtruth_event_label_word_mask, (1, 0)).astype(f32),
        jnp.broadcast_to(log_var.astype(f32)[:, None], (4, B)),
    ], axis=0).reshape(11 + 2 * L, B, 1)                                  # (11+2L,B,1)

    elems = 3 * B * C + L * B * W
    cost = pl.CostEstimate(
        flops=int(12 * elems + 64 * B),
        transcendentals=int(2 * elems + B * C + 16 * B),
        bytes_accessed=int(4 * (4 * B * C + L * B * W + (11 + 2 * L) * B + B)),
    )

    out = pl.pallas_call(
        _uwl_kernel,
        out_shape=jax.ShapeDtypeStruct((1, B), f32),
        in_specs=[pl.BlockSpec(memory_space=pltpu.MemorySpace.VMEM)] * 3,
        out_specs=pl.BlockSpec(memory_space=pltpu.MemorySpace.VMEM),
        compiler_params=pltpu.CompilerParams(
            allow_input_fusion=[True, True, True]),
        cost_estimate=cost,
    )(head, label_logits_t, sideband)
    return out[0]                                                         # (B,)


def _reference(log_var, type_logits, type_ids, src_logits, src_ids,
               dst_logits, dst_ids, node_mask, label_logits, label_ids,
               label_word_mask, ev_mask, src_mask, dst_mask, label_mask):
    lsm = lambda x: jax.nn.log_softmax(x, axis=-1)
    type_loss = -jnp.take_along_axis(lsm(type_logits), type_ids[:, None], 1)[:, 0] * ev_mask
    mask_add = jnp.log(node_mask + MASK_TINY)
    src_loss = -jnp.take_along_axis(lsm(src_logits + mask_add), src_ids[:, None], 1)[:, 0] * src_mask
    dst_loss = -jnp.take_along_axis(lsm(dst_logits + mask_add), dst_ids[:, None], 1)[:, 0] * dst_mask
    per_tok = -jnp.take_along_axis(lsm(label_logits), label_ids[..., None], 2)[..., 0]
    label_loss = jnp.sum(per_tok * (label_word_mask * label_mask[:, None]), axis=1)
    precision = jnp.exp(-log_var)
    reg = jnp.maximum(log_var, 0.0) + jnp.log1p(jnp.exp(-jnp.abs(log_var)))
    stacked = jnp.stack([type_loss, src_loss, dst_loss, label_loss], axis=1)
    return jnp.sum(stacked * precision + reg, axis=1)


if __name__ == "__main__":
    key = jax.random.PRNGKey(0)
    B, T, N, L, W = 8, 8, 16, 8, 32
    ks = jax.random.split(key, 16)

    event_type_logits = jax.random.normal(ks[0], (B, T), jnp.float32)
    groundtruth_event_type_ids = jax.random.randint(ks[1], (B,), 0, T)

    event_src_logits = jax.random.normal(ks[2], (B, N), jnp.float32)
    groundtruth_event_src_ids = jax.random.randint(ks[3], (B,), 0, N // 2)
    event_dst_logits = jax.random.normal(ks[4], (B, N), jnp.float32)
    groundtruth_event_dst_ids = jax.random.randint(ks[5], (B,), 0, N // 2)

    valid_counts = jax.random.randint(ks[6], (B, 1), N // 2, N + 1)
    batch_node_mask = (jax.lax.broadcasted_iota(jnp.int32, (B, N), 1)
                       < valid_counts).astype(jnp.float32)

    event_label_logits = jax.random.normal(ks[7], (B, L, W), jnp.float32)
    groundtruth_event_label_word_ids = jax.random.randint(ks[8], (B, L), 0, W)
    label_lens = jax.random.randint(ks[9], (B, 1), 1, L + 1)
    groundtruth_event_label_word_mask = (
        jax.lax.broadcasted_iota(jnp.int32, (B, L), 1) < label_lens
    ).astype(jnp.float32)

    groundtruth_event_mask = (jax.random.uniform(ks[10], (B,)) < 0.9).astype(jnp.float32)
    groundtruth_event_src_mask = (jax.random.uniform(ks[11], (B,)) < 0.7).astype(jnp.float32)
    groundtruth_event_dst_mask = (jax.random.uniform(ks[12], (B,)) < 0.7).astype(jnp.float32)
    groundtruth_event_label_mask = (jax.random.uniform(ks[13], (B,)) < 0.8).astype(jnp.float32)

    # parameter init in the module is zeros; use nonzero values here to
    # exercise the uncertainty-weighting path.
    log_var = jax.random.normal(ks[14], (4,), jnp.float32) * 0.5

    out = uncertainty_weighted_loss(
        log_var,
        event_type_logits, groundtruth_event_type_ids,
        event_src_logits, groundtruth_event_src_ids,
        event_dst_logits, groundtruth_event_dst_ids,
        batch_node_mask,
        event_label_logits,
        groundtruth_event_label_word_ids,
        groundtruth_event_label_word_mask,
        groundtruth_event_mask,
        groundtruth_event_src_mask,
        groundtruth_event_dst_mask,
        groundtruth_event_label_mask,
    )
    out = jax.block_until_ready(out)

    ref = _reference(
        log_var, event_type_logits, groundtruth_event_type_ids,
        event_src_logits, groundtruth_event_src_ids,
        event_dst_logits, groundtruth_event_dst_ids,
        batch_node_mask, event_label_logits,
        groundtruth_event_label_word_ids, groundtruth_event_label_word_mask,
        groundtruth_event_mask, groundtruth_event_src_mask,
        groundtruth_event_dst_mask, groundtruth_event_label_mask,
    )
    assert out.shape == (B,)
    assert jnp.allclose(out, ref, atol=1e-4, rtol=1e-4), (out, ref)
    print("KERNEL_OK")
</pallas_src>

<mosaic_0001>
module attributes {stable_mosaic.version = 11 : i64} {
  func.func @_uwl_kernel(%arg0: memref<4x8x16xf32, #tpu.memory_space<vmem>>, %arg1: memref<8x8x32xf32, #tpu.memory_space<vmem>>, %arg2: memref<27x8x1xf32, #tpu.memory_space<vmem>>, %arg3: memref<1x8xf32, #tpu.memory_space<vmem>>) attributes {dimension_semantics = [], scalar_prefetch = 0 : i64, scratch_operands = 0 : i64, tpu.core_type = #tpu.core_type<tc>} {
    %c0 = arith.constant 0 : index
    %c0_0 = arith.constant 0 : index
    %c0_1 = arith.constant 0 : index
    %0 = vector.load %arg2[%c0, %c0_0, %c0_1] : memref<27x8x1xf32, #tpu.memory_space<vmem>>, vector<27x8x1xf32>
    %1 = vector.extract_strided_slice %0 {offsets = [0, 0, 0], sizes = [3, 8, 1], strides = [1, 1, 1]} : vector<27x8x1xf32> to vector<3x8x1xf32>
    %2 = vector.extract_strided_slice %0 {offsets = [3, 0, 0], sizes = [4, 8, 1], strides = [1, 1, 1]} : vector<27x8x1xf32> to vector<4x8x1xf32>
    %3 = vector.extract_strided_slice %0 {offsets = [7, 0, 0], sizes = [8, 8, 1], strides = [1, 1, 1]} : vector<27x8x1xf32> to vector<8x8x1xf32>
    %4 = vector.extract_strided_slice %0 {offsets = [15, 0, 0], sizes = [8, 8, 1], strides = [1, 1, 1]} : vector<27x8x1xf32> to vector<8x8x1xf32>
    %5 = vector.extract_strided_slice %0 {offsets = [23, 0, 0], sizes = [4, 8, 1], strides = [1, 1, 1]} : vector<27x8x1xf32> to vector<4x8x1xf32>
    %c0_2 = arith.constant 0 : index
    %c0_3 = arith.constant 0 : index
    %c0_4 = arith.constant 0 : index
    %6 = vector.load %arg0[%c0_2, %c0_3, %c0_4] : memref<4x8x16xf32, #tpu.memory_space<vmem>>, vector<4x8x16xf32>
    %7 = vector.extract_strided_slice %6 {offsets = [0, 0, 0], sizes = [3, 8, 16], strides = [1, 1, 1]} : vector<4x8x16xf32> to vector<3x8x16xf32>
    %8 = vector.extract_strided_slice %6 {offsets = [3, 0, 0], sizes = [1, 8, 16], strides = [1, 1, 1]} : vector<4x8x16xf32> to vector<1x8x16xf32>
    %9 = vector.shape_cast %8 : vector<1x8x16xf32> to vector<8x16xf32>
    %cst = arith.constant 9.99999935E-39 : f32
    %10 = vector.broadcast %cst : f32 to vector<8x16xf32>
    %11 = arith.addf %9, %10 : vector<8x16xf32>
    %12 = math.log %11 : vector<8x16xf32>
    %13 = vector.shape_cast %12 : vector<8x16xf32> to vector<1x8x16xf32>
    %14 = vector.shape_cast %13 : vector<1x8x16xf32> to vector<1x8x16xf32>
    %15 = vector.broadcast %14 : vector<1x8x16xf32> to vector<3x8x16xf32>
    %16 = tpu.iota {dimensions = array<i32: 0>} : vector<3x8x16xi32>
    %c0_i32 = arith.constant 0 : i32
    %17 = vector.broadcast %c0_i32 : i32 to vector<3x8x16xi32>
    %18 = arith.cmpi sgt, %16, %17 : vector<3x8x16xi32>
    %cst_5 = arith.constant 0.000000e+00 : f32
    %19 = vector.broadcast %cst_5 : f32 to vector<3x8x16xf32>
    %20 = arith.select %18, %15, %19 : vector<3x8x16xi1>, vector<3x8x16xf32>
    %21 = arith.addf %7, %20 : vector<3x8x16xf32>
    %cst_6 = arith.constant dense<0xFF800000> : vector<3x8xf32>
    %22 = vector.multi_reduction <maximumf>, %21, %cst_6 [2] : vector<3x8x16xf32> to vector<3x8xf32>
    %23 = vector.shape_cast %22 : vector<3x8xf32> to vector<3x8x1xf32>
    %24 = vector.broadcast %23 : vector<3x8x1xf32> to vector<3x8x16xf32>
    %25 = arith.subf %21, %24 : vector<3x8x16xf32>
    %26 = math.exp %25 : vector<3x8x16xf32>
    %cst_7 = arith.constant dense<0.000000e+00> : vector<3x8xf32>
    %27 = vector.multi_reduction <add>, %26, %cst_7 [2] : vector<3x8x16xf32> to vector<3x8xf32>
    %28 = vector.shape_cast %27 : vector<3x8xf32> to vector<3x8x1xf32>
    %29 = math.log %28 : vector<3x8x1xf32>
    %30 = arith.addf %23, %29 : vector<3x8x1xf32>
    %31 = tpu.iota {dimensions = array<i32: 2>} : vector<3x8x16xi32>
    %32 = arith.fptosi %1 : vector<3x8x1xf32> to vector<3x8x1xi32>
    %33 = vector.broadcast %32 : vector<3x8x1xi32> to vector<3x8x16xi32>
    %34 = arith.cmpi eq, %31, %33 : vector<3x8x16xi32>
    %cst_8 = arith.constant 0.000000e+00 : f32
    %35 = vector.broadcast %cst_8 : f32 to vector<3x8x16xf32>
    %36 = arith.select %34, %21, %35 : vector<3x8x16xi1>, vector<3x8x16xf32>
    %cst_9 = arith.constant dense<0.000000e+00> : vector<3x8xf32>
    %37 = vector.multi_reduction <add>, %36, %cst_9 [2] : vector<3x8x16xf32> to vector<3x8xf32>
    %38 = vector.shape_cast %37 : vector<3x8xf32> to vector<3x8x1xf32>
    %39 = arith.subf %30, %38 : vector<3x8x1xf32>
    %40 = vector.extract_strided_slice %39 {offsets = [0, 0, 0], sizes = [1, 8, 1], strides = [1, 1, 1]} : vector<3x8x1xf32> to vector<1x8x1xf32>
    %41 = vector.shape_cast %40 : vector<1x8x1xf32> to vector<8x1xf32>
    %42 = vector.extract_strided_slice %2 {offsets = [0, 0, 0], sizes = [1, 8, 1], strides = [1, 1, 1]} : vector<4x8x1xf32> to vector<1x8x1xf32>
    %43 = vector.shape_cast %42 : vector<1x8x1xf32> to vector<8x1xf32>
    %44 = arith.mulf %41, %43 : vector<8x1xf32>
    %45 = vector.extract_strided_slice %39 {offsets = [1, 0, 0], sizes = [1, 8, 1], strides = [1, 1, 1]} : vector<3x8x1xf32> to vector<1x8x1xf32>
    %46 = vector.shape_cast %45 : vector<1x8x1xf32> to vector<8x1xf32>
    %47 = vector.extract_strided_slice %2 {offsets = [1, 0, 0], sizes = [1, 8, 1], strides = [1, 1, 1]} : vector<4x8x1xf32> to vector<1x8x1xf32>
    %48 = vector.shape_cast %47 : vector<1x8x1xf32> to vector<8x1xf32>
    %49 = arith.mulf %46, %48 : vector<8x1xf32>
    %50 = vector.extract_strided_slice %39 {offsets = [2, 0, 0], sizes = [1, 8, 1], strides = [1, 1, 1]} : vector<3x8x1xf32> to vector<1x8x1xf32>
    %51 = vector.shape_cast %50 : vector<1x8x1xf32> to vector<8x1xf32>
    %52 = vector.extract_strided_slice %2 {offsets = [2, 0, 0], sizes = [1, 8, 1], strides = [1, 1, 1]} : vector<4x8x1xf32> to vector<1x8x1xf32>
    %53 = vector.shape_cast %52 : vector<1x8x1xf32> to vector<8x1xf32>
    %54 = arith.mulf %51, %53 : vector<8x1xf32>
    %c0_10 = arith.constant 0 : index
    %c0_11 = arith.constant 0 : index
    %c0_12 = arith.constant 0 : index
    %55 = vector.load %arg1[%c0_10, %c0_11, %c0_12] : memref<8x8x32xf32, #tpu.memory_space<vmem>>, vector<8x8x32xf32>
    %cst_13 = arith.constant dense<0xFF800000> : vector<8x8xf32>
    %56 = vector.multi_reduction <maximumf>, %55, %cst_13 [2] : vector<8x8x32xf32> to vector<8x8xf32>
    %57 = vector.shape_cast %56 : vector<8x8xf32> to vector<8x8x1xf32>
    %58 = vector.broadcast %57 : vector<8x8x1xf32> to vector<8x8x32xf32>
    %59 = arith.subf %55, %58 : vector<8x8x32xf32>
    %60 = math.exp %59 : vector<8x8x32xf32>
    %cst_14 = arith.constant dense<0.000000e+00> : vector<8x8xf32>
    %61 = vector.multi_reduction <add>, %60, %cst_14 [2] : vector<8x8x32xf32> to vector<8x8xf32>
    %62 = vector.shape_cast %61 : vector<8x8xf32> to vector<8x8x1xf32>
    %63 = math.log %62 : vector<8x8x1xf32>
    %64 = arith.addf %57, %63 : vector<8x8x1xf32>
    %65 = tpu.iota {dimensions = array<i32: 2>} : vector<8x8x32xi32>
    %66 = arith.fptosi %3 : vector<8x8x1xf32> to vector<8x8x1xi32>
    %67 = vector.broadcast %66 : vector<8x8x1xi32> to vector<8x8x32xi32>
    %68 = arith.cmpi eq, %65, %67 : vector<8x8x32xi32>
    %cst_15 = arith.constant 0.000000e+00 : f32
    %69 = vector.broadcast %cst_15 : f32 to vector<8x8x32xf32>
    %70 = arith.select %68, %55, %69 : vector<8x8x32xi1>, vector<8x8x32xf32>
    %cst_16 = arith.constant dense<0.000000e+00> : vector<8x8xf32>
    %71 = vector.multi_reduction <add>, %70, %cst_16 [2] : vector<8x8x32xf32> to vector<8x8xf32>
    %72 = vector.shape_cast %71 : vector<8x8xf32> to vector<8x8x1xf32>
    %73 = arith.subf %64, %72 : vector<8x8x1xf32>
    %74 = arith.mulf %73, %4 : vector<8x8x1xf32>
    %cst_17 = arith.constant dense<0.000000e+00> : vector<8x1xf32>
    %75 = vector.multi_reduction <add>, %74, %cst_17 [0] : vector<8x8x1xf32> to vector<8x1xf32>
    %76 = vector.extract_strided_slice %2 {offsets = [3, 0, 0], sizes = [1, 8, 1], strides = [1, 1, 1]} : vector<4x8x1xf32> to vector<1x8x1xf32>
    %77 = vector.shape_cast %76 : vector<1x8x1xf32> to vector<8x1xf32>
    %78 = arith.mulf %75, %77 : vector<8x1xf32>
    %cst_18 = arith.constant 0.000000e+00 : f32
    %79 = vector.broadcast %cst_18 : f32 to vector<4x8x1xf32>
    %80 = arith.subf %79, %5 : vector<4x8x1xf32>
    %81 = math.exp %80 : vector<4x8x1xf32>
    %cst_19 = arith.constant 0.000000e+00 : f32
    %82 = vector.broadcast %cst_19 : f32 to vector<4x8x1xf32>
    %83 = arith.maximumf %5, %82 : vector<4x8x1xf32>
    %84 = math.absf %5 : vector<4x8x1xf32>
    %cst_20 = arith.constant 0.000000e+00 : f32
    %85 = vector.broadcast %cst_20 : f32 to vector<4x8x1xf32>
    %86 = arith.subf %85, %84 : vector<4x8x1xf32>
    %87 = math.exp %86 : vector<4x8x1xf32>
    %88 = math.log1p %87 : vector<4x8x1xf32>
    %89 = arith.addf %83, %88 : vector<4x8x1xf32>
    %90 = vector.extract_strided_slice %89 {offsets = [0, 0, 0], sizes = [1, 8, 1], strides = [1, 1, 1]} : vector<4x8x1xf32> to vector<1x8x1xf32>
    %91 = vector.shape_cast %90 : vector<1x8x1xf32> to vector<8x1xf32>
    %92 = vector.extract_strided_slice %89 {offsets = [1, 0, 0], sizes = [1, 8, 1], strides = [1, 1, 1]} : vector<4x8x1xf32> to vector<1x8x1xf32>
    %93 = vector.shape_cast %92 : vector<1x8x1xf32> to vector<8x1xf32>
    %94 = arith.addf %91, %93 : vector<8x1xf32>
    %95 = vector.extract_strided_slice %89 {offsets = [2, 0, 0], sizes = [1, 8, 1], strides = [1, 1, 1]} : vector<4x8x1xf32> to vector<1x8x1xf32>
    %96 = vector.shape_cast %95 : vector<1x8x1xf32> to vector<8x1xf32>
    %97 = arith.addf %94, %96 : vector<8x1xf32>
    %98 = vector.extract_strided_slice %89 {offsets = [3, 0, 0], sizes = [1, 8, 1], strides = [1, 1, 1]} : vector<4x8x1xf32> to vector<1x8x1xf32>
    %99 = vector.shape_cast %98 : vector<1x8x1xf32> to vector<8x1xf32>
    %100 = arith.addf %97, %99 : vector<8x1xf32>
    %101 = vector.extract_strided_slice %81 {offsets = [0, 0, 0], sizes = [1, 8, 1], strides = [1, 1, 1]} : vector<4x8x1xf32> to vector<1x8x1xf32>
    %102 = vector.shape_cast %101 : vector<1x8x1xf32> to vector<8x1xf32>
    %103 = arith.mulf %44, %102 : vector<8x1xf32>
    %104 = vector.extract_strided_slice %81 {offsets = [1, 0, 0], sizes = [1, 8, 1], strides = [1, 1, 1]} : vector<4x8x1xf32> to vector<1x8x1xf32>
    %105 = vector.shape_cast %104 : vector<1x8x1xf32> to vector<8x1xf32>
    %106 = arith.mulf %49, %105 : vector<8x1xf32>
    %107 = arith.addf %103, %106 : vector<8x1xf32>
    %108 = vector.extract_strided_slice %81 {offsets = [2, 0, 0], sizes = [1, 8, 1], strides = [1, 1, 1]} : vector<4x8x1xf32> to vector<1x8x1xf32>
    %109 = vector.shape_cast %108 : vector<1x8x1xf32> to vector<8x1xf32>
    %110 = arith.mulf %54, %109 : vector<8x1xf32>
    %111 = arith.addf %107, %110 : vector<8x1xf32>
    %112 = vector.extract_strided_slice %81 {offsets = [3, 0, 0], sizes = [1, 8, 1], strides = [1, 1, 1]} : vector<4x8x1xf32> to vector<1x8x1xf32>
    %113 = vector.shape_cast %112 : vector<1x8x1xf32> to vector<8x1xf32>
    %114 = arith.mulf %78, %113 : vector<8x1xf32>
    %115 = arith.addf %111, %114 : vector<8x1xf32>
    %116 = arith.addf %115, %100 : vector<8x1xf32>
    %117 = tpu.iota {dimensions = array<i32: 0>} : vector<8x8xi32>
    %118 = tpu.iota {dimensions = array<i32: 1>} : vector<8x8xi32>
    %119 = arith.cmpi eq, %117, %118 : vector<8x8xi32>
    %120 = vector.shape_cast %116 : vector<8x1xf32> to vector<8x1xf32>
    %121 = vector.broadcast %120 : vector<8x1xf32> to vector<8x8xf32>
    %cst_21 = arith.constant 0.000000e+00 : f32
    %122 = vector.broadcast %cst_21 : f32 to vector<8x8xf32>
    %123 = arith.select %119, %121, %122 : vector<8x8xi1>, vector<8x8xf32>
    %cst_22 = arith.constant dense<0.000000e+00> : vector<8xf32>
    %124 = vector.multi_reduction <add>, %123, %cst_22 [0] : vector<8x8xf32> to vector<8xf32>
    %125 = vector.shape_cast %124 : vector<8xf32> to vector<1x8xf32>
    %c0_23 = arith.constant 0 : index
    %c0_24 = arith.constant 0 : index
    %126 = vector.load %arg3[%c0_23, %c0_24] : memref<1x8xf32, #tpu.memory_space<vmem>>, vector<1x8xf32>
    tpu.vector_store %arg3[%c0_23, %c0_24], %125 {strides = array<i32>} : memref<1x8xf32, #tpu.memory_space<vmem>>, vector<1x8xf32>,
    return
  }
}

</mosaic_0001>

<bundles_post_ra>
// kernel: uncertainty_weighted_loss.2
= control target key start
LH: loop header
LB: loop body
LE: loop exit
PB: predicated region body
PF: predicated region fallthrough
CT: control target
= control target key end

     0   :  { %s1261_s0 = inlined_call_operand.vmem [shape: f32[27,8,1], index: 0, kind: input, shape index: {}]   ;;  %s1262_s1 = inlined_call_operand.vmem [shape: f32[8,8,32], index: 1, kind: input, shape index: {}]   ;;  %s1263_s2 = inlined_call_operand.vmem [shape: f32[1,8,16], index: 2, kind: input, shape index: {}]   ;;  %s1264_s3 = inlined_call_operand.<no memory space> [shape: f32[], index: 3, kind: input, shape index: {}]   ;;  %s1265_s4 = inlined_call_operand.vmem [shape: f32[1,8,16], index: 4, kind: input, shape index: {}]   ;;  %s1266_s5 = inlined_call_operand.vmem [shape: f32[1,8,16], index: 5, kind: input, shape index: {}]   ;;  %s1267_s6 = inlined_call_operand.vmem [shape: f32[1,8,16], index: 6, kind: input, shape index: {}]   ;;  %s1268_s7 = inlined_call_operand.hbm [shape: f32[1,8], index: 7, kind: output, shape index: {}]  }
   0x1   :  { %v12_v0 = vstv %s1264_s3 }
   0x2   :  { %v870_v1 = vld [vmem:[%s1262_s1] sm:$0xff]  ;;  %vm359_vm0 = vcmask 261120   ;;  %v875_v2 = vld [vmem:[%s1262_s1 + $0x10] sm:$0xff]  ;;  %v880_v3 = vld [vmem:[%s1262_s1 + $0x8] sm:$0xff]  ;;  %v123_v4 = vlaneseq  ;;  %v822_v8 = vmov 0  }
   0x3   :  { %v360_v5 = vsel %vm359_vm0, %v870_v1, -inf  ;;  %v366_v6 = vsel %vm359_vm0, %v875_v2, -inf  ;;  %v889_v7 = vld [vmem:[%s1262_s1 + $0x18] sm:$0xff]  ;;  %726 = vset.pattern.permute.xlu1 %v822_v8  ;;  %727 = vset.pattern.permute.xlu0 %v822_v8  ;;  %v363_v9 = vsel %vm359_vm0, %v880_v3, -inf  ;;  %v898_v11 = vld [vmem:[%s1262_s1 + $0x20] sm:$0xff]  ;;  %v912_v15 = vld [vmem:[%s1262_s1 + $0x28] sm:$0xff] }
   0x4   :  { %361 = vmax.xlane.f32.xlu0 %v360_v5  ;;  %367 = vmax.xlane.f32.xlu1 %v366_v6  ;;  %v369_v10 = vsel %vm359_vm0, %v889_v7, -inf  ;;  %v122_v12 = vld [vmem:[%s1267_s6] sm:$0xff]  ;;  %v904_v13 = vand.u32 127, %v123_v4  ;;  %v372_v17 = vsel %vm359_vm0, %v898_v11, -inf  ;;  %v375_v20 = vsel %vm359_vm0, %v912_v15, -inf }
   0x5   :  { %v113_v14 = vld [vmem:[%s1263_s2] sm:$0xff] }
   0x6   :  { %v121_v16 = vld [vmem:[%s1266_s5] sm:$0xff]  ;;  %vm126_vm1 = vcmp.lt.s32.totalorder %v904_v13, 16 }
   0x7   :  { %v127_v18 = vsel %vm126_vm1, %v122_v12, %v12_v0  ;;  %v186_v19 = vsel %vm126_vm1, %v113_v14, %v12_v0  ;;  %v146_v23 = vsel %vm126_vm1, %v121_v16, %v12_v0 }
   0x8   :  { %364 = vmax.xlane.f32.xlu0 %v363_v9  ;;  %370 = vmax.xlane.f32.xlu1 %v369_v10  ;;  %v130_v21 = vmax.f32 %v127_v18, %v12_v0  ;;  %v197_v22 = vmax.f32 %v12_v0, %v186_v19 }
   0x9   :  { %16 = vsyncpa [#allocation23], 0  ;;  %v931_v24 = vld [vmem:[%s1262_s1 + $0x30] sm:$0xff]  ;;  %v936_v25 = vld [vmem:[%s1262_s1 + $0x38] sm:$0xff]  ;;  %v149_v28 = vmax.f32 %v12_v0, %v146_v23  ;;  %vm279_vm2 = vcmask 130048   ;;  %vm544_vm14 = vcmask 7168  }
   0xa   :  { %v117_v26 = vld [vmem:[%s1265_s4] sm:$0xff]  ;;  %v134_v27 = vmax.f32 %v130_v21, %v12_v0  ;;  %728 = vlog2.f32 %v197_v22  ;;  %v378_v29 = vsel %vm359_vm0, %v931_v24, -inf  ;;  %v381_v30 = vsel %vm359_vm0, %v936_v25, -inf  ;;  %v247_v44 = vld [vmem:[%s1261_s0 + $0x38] sm:$0xff]  ;;  %v249_v46 = vld [vmem:[%s1261_s0 + $0x48] sm:$0xff] }
   0xb   :  { %v166_v32 = vsel %vm126_vm1, %v117_v26, %v12_v0  ;;  %v153_v34 = vmax.f32 %v149_v28, %v12_v0  ;;  %v708_v45 = vtrunc.f32 %v247_v44  ;;  %v248_v47 = vld [vmem:[%s1261_s0 + $0x40] sm:$0xff]  ;;  %v712_v49 = vtrunc.f32 %v249_v46  ;;  %v250_v51 = vld [vmem:[%s1261_s0 + $0x50] sm:$0xff]  ;;  %v251_v57 = vld [vmem:[%s1261_s0 + $0x58] sm:$0xff] }
   0xc   :  { %373 = vmax.xlane.f32.xlu0 %v372_v17  ;;  %376 = vmax.xlane.f32.xlu1 %v375_v20  ;;  %v945_v31 = vmax.f32 %v134_v27, %v12_v0  ;;  %v173_v33 = vmax.f32 %v12_v0, %v166_v32  ;;  %v710_v50 = vtrunc.f32 %v248_v47  ;;  %v242_v52 = vld [vmem:[%s1261_s0 + $0x10] sm:$0xff]  ;;  %v714_v54 = vtrunc.f32 %v250_v51  ;;  %v252_v61 = vld [vmem:[%s1261_s0 + $0x60] sm:$0xff]  ;;  %v241_v17 = vld [vmem:[%s1261_s0 + $0x8] sm:$0xff] }
   0xd   :  { %v157_v37 = vmax.f32 %v153_v34, %v12_v0  ;;  %v709_v48 = vcvt.f32.s32 %v708_v45  ;;  %v713_v53 = vcvt.f32.s32 %v712_v49  ;;  %v706_v56 = vtrunc.f32 %v242_v52  ;;  %v254_v8 = vld [vmem:[%s1261_s0 + $0x70] sm:$0xff]  ;;  %v240_v12 = vld [vmem:[%s1261_s0] sm:$0xff] }
   0xe   :  { %v280_v35 = vsel %vm279_vm2, %v945_v31, -inf  ;;  %v177_v36 = vmax.f32 %v173_v33, %v12_v0  ;;  %v711_v55 = vcvt.f32.s32 %v710_v50  ;;  %v715_v58 = vcvt.f32.s32 %v714_v54  ;;  %v253_v0 = vld [vmem:[%s1261_s0 + $0x68] sm:$0xff] }
   0xf   :  { %v716_v59 = vtrunc.f32 %v251_v57  ;;  %v707_v60 = vcvt.f32.s32 %v706_v56  ;;  %v718_v63 = vtrunc.f32 %v252_v61  ;;  %v720_v6 = vtrunc.f32 %v253_v0 }
  0x10   :  { %379 = vmax.xlane.f32.xlu0 %v378_v29  ;;  %382 = vmax.xlane.f32.xlu1 %v381_v30  ;;  %v722_v10 = vtrunc.f32 %v254_v8  ;;  %v702_v16 = vtrunc.f32 %v240_v12  ;;  %v704_v19 = vtrunc.f32 %v241_v17 }
  0x11   :  { %v717_v62 = vcvt.f32.s32 %v716_v59  ;;  %v719_v5 = vcvt.f32.s32 %v718_v63  ;;  %v721_v9 = vcvt.f32.s32 %v720_v6 }
  0x12   :  { %v723_v14 = vcvt.f32.s32 %v722_v10  ;;  %v703_v18 = vcvt.f32.s32 %v702_v16  ;;  %v705_v20 = vcvt.f32.s32 %v704_v19 }
  0x14   :  { %281 = vmax.xlane.f32.xlu0 %v280_v35  ;;  %v729_v38 = vpop.eup %728 }
  0x15   :  { %v273_v39 = vmul.f32 0.6931472, %v729_v38 }
  0x17   :  { %v951_v40 = vadd.f32 %v273_v39, %v177_v36  ;;  %v953_v41 = vadd.f32 %v273_v39, %v157_v37 }
  0x19   :  { %v286_v42 = vsel %vm279_vm2, %v951_v40, -inf  ;;  %v283_v43 = vsel %vm279_vm2, %v953_v41, -inf }
  0x1a   :  { %287 = vmax.xlane.f32.xlu0 %v286_v42  ;;  %284 = vmax.xlane.f32.xlu1 %v283_v43 }
  0x2b   :  { %465 = vperm.xlu1 %726, %v709_v48  }
  0x2f   :  { %471 = vperm.xlu1 %726, %v713_v53  }
  0x30   :  { %468 = vperm.xlu0 %727, %v711_v55  }
  0x33   :  { %474 = vperm.xlu1 %726, %v715_v58  }
  0x34   :  { %328 = vperm.xlu0 %727, %v707_v60  }
  0x37   :  { %477 = vperm.xlu1 %726, %v717_v62  }
  0x3b   :  { %480 = vperm.xlu1 %726, %v719_v5  }
  0x3f   :  { %483 = vperm.xlu1 %726, %v721_v9  }
  0x43   :  { %486 = vperm.xlu1 %726, %v723_v14  }
  0x47   :  { %322 = vperm.xlu1 %726, %v703_v18  }
  0x4b   :  { %325 = vperm.xlu1 %726, %v705_v20  }
  0x91   :  { %v992_v21 = vpop.xlane.xlu0 %361  ;;  %v994_v22 = vpop.xlane.xlu1 %367 }
  0x92   :  { %v384_v29 = vsub.f32 %v870_v1, %v992_v21  ;;  %v386_v36 = vsub.f32 %v875_v2, %v994_v22 }
  0x94   :  { %v392_v33 = vmul.f32 1.442695, %v384_v29  ;;  %v396_v44 = vmul.f32 1.442695, %v386_v36 }
  0x95   :  { %v996_v23 = vpop.xlane.xlu0 %364  ;;  %v998_v26 = vpop.xlane.xlu1 %370 }
  0x96   :  { %v385_v32 = vsub.f32 %v880_v3, %v996_v23  ;;  %v387_v34 = vsub.f32 %v889_v7, %v998_v26  ;;  %730 = vpow2.f32 %v392_v33 }
  0x98   :  { %v394_v37 = vmul.f32 1.442695, %v385_v32  ;;  %v398_v38 = vmul.f32 1.442695, %v387_v34 }
  0x99   :  { %v1000_v27 = vpop.xlane.xlu0 %373  ;;  %v1002_v28 = vpop.xlane.xlu1 %376 }
  0x9a   :  { %v389_v39 = vsub.f32 %v912_v15, %v1002_v28  ;;  %732 = vpow2.f32 %v394_v37  ;;  %v388_v45 = vsub.f32 %v898_v11, %v1000_v27 }
  0x9b   :  { %734 = vpow2.f32 %v398_v38 }
  0x9c   :  { %v402_v46 = vmul.f32 1.442695, %v389_v39  ;;  %736 = vpow2.f32 %v396_v44  ;;  %v400_v50 = vmul.f32 1.442695, %v388_v45 }
  0x9d   :  { %v1006_v30 = vpop.xlane.xlu0 %379  ;;  %v1012_v35 = vpop.xlane.xlu1 %382 }
  0x9e   :  { %v391_v47 = vsub.f32 %v936_v25, %v1012_v35  ;;  %v390_v51 = vsub.f32 %v931_v24, %v1006_v30  ;;  %738 = vpow2.f32 %v402_v46 }
  0x9f   :  { %740 = vpow2.f32 %v400_v50 }
  0xa0   :  { %v406_v52 = vmul.f32 1.442695, %v391_v47  ;;  %v731_v56 = vpop.eup %730  ;;  %v404_v59 = vmul.f32 1.442695, %v390_v51 }
  0xa1   :  { %v1018_v42 = vpop.xlane.xlu0 %281  ;;  %v408_v0 = vsel %vm359_vm0, %v731_v56, 0.0 }
  0xa2   :  { %742 = vpow2.f32 %v406_v52  ;;  %v289_v60 = vsub.f32 %v945_v31, %v1018_v42 }
  0xa3   :  { %744 = vpow2.f32 %v404_v59 }
  0xa4   :  { %v733_v63 = vpop.eup %732  ;;  %v292_v8 = vmul.f32 1.442695, %v289_v60 }
  0xa5   :  { %v735_v5 = vpop.eup %734  ;;  %v411_v12 = vsel %vm359_vm0, %v733_v63, 0.0 }
  0xa6   :  { %v737_v10 = vpop.eup %736 }
  0xa7   :  { %v1020_v43 = vpop.xlane.xlu1 %284  ;;  %v1026_v48 = vpop.xlane.xlu0 %287  ;;  %v414_v19 = vsel %vm359_vm0, %v737_v10, 0.0  ;;  %v1095_v10 = vld [vmem:[%s1261_s0 + $0xc8] sm:$0xff] }
  0xa8   :  { %v290_v53 = vsub.f32 %v953_v41, %v1020_v43  ;;  %v291_v9 = vsub.f32 %v951_v40, %v1026_v48  ;;  %v739_v14 = vpop.eup %738 }
  0xa9   :  { %v741_v18 = vpop.eup %740  ;;  %v423_v20 = vsel %vm359_vm0, %v739_v14, 0.0 }
  0xaa   :  { %v294_v61 = vmul.f32 1.442695, %v290_v53  ;;  %v296_v17 = vmul.f32 1.442695, %v291_v9  ;;  %v420_v34 = vsel %vm359_vm0, %v741_v18, 0.0 }
  0xab   :  { %v466_v49 = vpop.permute.xlu1 %465 }
  0xac   :  { %vm488_vm3 = vcmp.eq.s32.totalorder %v904_v13, %v466_v49  ;;  %746 = vpow2.f32 %v294_v61  ;;  %v743_v29 = vpop.eup %742 }
  0xad   :  { %v496_v54 = vsel %vm488_vm3, %v870_v1, 0.0  ;;  %748 = vpow2.f32 %v292_v8  ;;  %v745_v33 = vpop.eup %744  ;;  %v429_v36 = vsel %vm359_vm0, %v743_v29, 0.0 }
  0xae   :  { %v504_v55 = vsel %vm359_vm0, %v496_v54, 0.0  ;;  %750 = vpow2.f32 %v296_v17  ;;  %v426_v39 = vsel %vm359_vm0, %v745_v33, 0.0 }
  0xaf   :  { %v469_v57 = vpop.permute.xlu0 %468  ;;  %505 = vadd.xlane.f32.xlu1 %v504_v55  ;;  %v472_v58 = vpop.permute.xlu1 %471 }
  0xb0   :  { %vm489_vm4 = vcmp.eq.s32.totalorder %v904_v13, %v469_v57  ;;  %vm490_vm5 = vcmp.eq.s32.totalorder %v904_v13, %v472_v58 }
  0xb1   :  { %v497_v62 = vsel %vm489_vm4, %v880_v3, 0.0  ;;  %v417_v3 = vsel %vm359_vm0, %v735_v5, 0.0  ;;  %v498_v47 = vsel %vm490_vm5, %v875_v2, 0.0  ;;  %v1083_v5 = vld [vmem:[%s1261_s0 + $0xb8] sm:$0xff]  ;;  %vm653_vm4 = vcmask 64512  }
  0xb2   :  { %v507_v1 = vsel %vm359_vm0, %v497_v62, 0.0  ;;  %v510_v50 = vsel %vm359_vm0, %v498_v47, 0.0  ;;  %v561_v29 = vsub.f32 0.0, %v1083_v5  ;;  %vm661_vm5 = vcmask 57344  }
  0xb3   :  { %508 = vadd.xlane.f32.xlu0 %v507_v1  ;;  %409 = vadd.xlane.f32.xlu1 %v408_v0  ;;  %v475_v6 = vpop.permute.xlu1 %474 }
  0xb4   :  { %vm491_vm7 = vcmp.eq.s32.totalorder %v904_v13, %v475_v6 }
  0xb5   :  { %v499_v55 = vsel %vm491_vm7, %v889_v7, 0.0 }
  0xb6   :  { %v747_v37 = vpop.eup %746  ;;  %v513_v57 = vsel %vm359_vm0, %v499_v55, 0.0 }
  0xb7   :  { %412 = vadd.xlane.f32.xlu0 %v411_v12  ;;  %418 = vadd.xlane.f32.xlu1 %v417_v3  ;;  %v478_v16 = vpop.permute.xlu1 %477  ;;  %v301_v44 = vsel %vm279_vm2, %v747_v37, 0.0  ;;  %v749_v45 = vpop.eup %748  ;;  %v1100_v12 = vld [vmem:[%s1261_s0 + $0xd0] sm:$0xff]  ;;  %v579_v3 = vand.u32 2147483647, %v1095_v10  ;;  %v565_v37 = vmul.f32 1.442695, %v561_v29 }
  0xb8   :  { %vm492_vm6 = vcmp.eq.s32.totalorder %v904_v13, %v478_v16  ;;  %v298_v49 = vsel %vm279_vm2, %v749_v45, 0.0  ;;  %v751_v51 = vpop.eup %750  ;;  %v580_v16 = vand.u32 2147483647, %v1100_v12  ;;  %v563_v45 = vsub.f32 0.0, %v1095_v10 }
  0xb9   :  { %v500_v52 = vsel %vm492_vm6, %v898_v11, 0.0  ;;  %v304_v54 = vsel %vm279_vm2, %v751_v51, 0.0  ;;  %v329_v11 = vpop.permute.xlu0 %328  ;;  %v583_v17 = vsub.f32 0.0, %v579_v3 }
  0xba   :  { %v516_v2 = vsel %vm359_vm0, %v500_v52, 0.0  ;;  %vm332_vm11 = vcmp.eq.s32.totalorder %v904_v13, %v329_v11  ;;  %v584_v18 = vsub.f32 0.0, %v580_v16  ;;  %v569_v52 = vmul.f32 1.442695, %v563_v45 }
  0xbb   :  { %415 = vadd.xlane.f32.xlu0 %v414_v19  ;;  %424 = vadd.xlane.f32.xlu1 %v423_v20  ;;  %v481_v32 = vpop.permute.xlu1 %480  ;;  %v335_v63 = vsel %vm332_vm11, %v951_v40, 0.0  ;;  %v1089_v40 = vld [vmem:[%s1261_s0 + $0xc0] sm:$0xff]  ;;  %v589_v20 = vmul.f32 1.442695, %v583_v17 }
  0xbc   :  { %vm493_vm9 = vcmp.eq.s32.totalorder %v904_v13, %v481_v32  ;;  %v578_v6 = vand.u32 2147483647, %v1089_v40  ;;  %v591_v32 = vmul.f32 1.442695, %v584_v18  ;;  %v562_v47 = vsub.f32 0.0, %v1089_v40  ;;  %v256_v17 = vld [vmem:[%s1261_s0 + $0x80] sm:$0xff] }
  0xbd   :  { %v501_v59 = vsel %vm493_vm9, %v912_v15, 0.0 }
  0xbe   :  { %v582_v9 = vsub.f32 0.0, %v578_v6 }
  0xbf   :  { %421 = vadd.xlane.f32.xlu0 %v420_v34  ;;  %430 = vadd.xlane.f32.xlu1 %v429_v36  ;;  %v484_v38 = vpop.permute.xlu1 %483 }
  0xc0   :  { %vm494_vm8 = vcmp.eq.s32.totalorder %v904_v13, %v484_v38  ;;  %v587_v14 = vmul.f32 1.442695, %v582_v9 }
  0xc1   :  { %v502_v56 = vsel %vm494_vm8, %v931_v24, 0.0  ;;  %v519_v24 = vsel %vm359_vm0, %v501_v59, 0.0 }
  0xc2   :  { %v522_v58 = vsel %vm359_vm0, %v502_v56, 0.0 }
  0xc3   :  { %427 = vadd.xlane.f32.xlu0 %v426_v39  ;;  %302 = vadd.xlane.f32.xlu1 %v301_v44  ;;  %v487_v46 = vpop.permute.xlu1 %486 }
  0xc4   :  { %vm495_vm12 = vcmp.eq.s32.totalorder %v904_v13, %v487_v46 }
  0xc5   :  { %v503_v62 = vsel %vm495_vm12, %v936_v25, 0.0  ;;  %v577_v25 = vand.u32 2147483647, %v1083_v5 }
  0xc6   :  { %v525_v15 = vsel %vm359_vm0, %v503_v62, 0.0 }
  0xc7   :  { %299 = vadd.xlane.f32.xlu0 %v298_v49  ;;  %511 = vadd.xlane.f32.xlu1 %v510_v50  ;;  %v323_v53 = vpop.permute.xlu1 %322  ;;  %v581_v8 = vsub.f32 0.0, %v577_v25 }
  0xc8   :  { %vm330_vm10 = vcmp.eq.s32.totalorder %v904_v13, %v323_v53  ;;  %v564_v53 = vsub.f32 0.0, %v1100_v12 }
  0xc9   :  { %v333_v60 = vsel %vm330_vm10, %v945_v31, 0.0  ;;  %v342_v31 = vsel %vm279_vm2, %v335_v63, 0.0 }
  0xca   :  { %v336_v61 = vsel %vm279_vm2, %v333_v60, 0.0  ;;  %v571_v59 = vmul.f32 1.442695, %v564_v53 }
  0xcb   :  { %305 = vadd.xlane.f32.xlu0 %v304_v54  ;;  %517 = vadd.xlane.f32.xlu1 %v516_v2  ;;  %v326_v7 = vpop.permute.xlu1 %325  ;;  %v567_v2 = vmul.f32 1.442695, %v562_v47 }
  0xcc   :  { %vm331_vm13 = vcmp.eq.s32.totalorder %v904_v13, %v326_v7 }
  0xcd   :  { %v334_v1 = vsel %vm331_vm13, %v953_v41, 0.0  ;;  %v585_v41 = vmul.f32 1.442695, %v581_v8 }
  0xce   :  { %v339_v0 = vsel %vm279_vm2, %v334_v1, 0.0 }
  0xcf   :  { %514 = vadd.xlane.f32.xlu0 %v513_v57  ;;  %523 = vadd.xlane.f32.xlu1 %v522_v58  ;;  %752 = vpow2.f32 %v585_v41 }
  0xd0   :  { %754 = vpow2.f32 %v587_v14 }
  0xd3   :  { %520 = vadd.xlane.f32.xlu0 %v519_v24  ;;  %337 = vadd.xlane.f32.xlu1 %v336_v61 }
  0xd7   :  { %526 = vadd.xlane.f32.xlu0 %v525_v15  ;;  %343 = vadd.xlane.f32.xlu1 %v342_v31 }
  0xd9   :  { %v1109_v36 = vpop.eup %752 }
  0xda   :  { %v1111_v38 = vpop.eup %754  ;;  %v593_v46 = vadd.f32 1.0, %v1109_v36  ;;  %v596_v60 = vmul.f32 -0.5, %v1109_v36  ;;  %v599_v3 = vand.u32 2147483647, %v1109_v36 }
  0xdb   :  { %340 = vadd.xlane.f32.xlu0 %v339_v0  ;;  %v602_v49 = vadd.f32 1.0, %v1111_v38  ;;  %v605_v24 = vmul.f32 -0.5, %v1111_v38 }
  0xdc   :  { %v597_v8 = vadd.f32 1.0, %v596_v60  ;;  %vm1152_vm15 = vcmp.lt.f32.partialorder %v599_v3, 0.0004427343  ;;  %v574_v60 = vmax.f32 %v1089_v40, 0.0 }
  0xdd   :  { %v606_v14 = vadd.f32 1.0, %v605_v24 }
  0xde   :  { %v1147_v45 = vmul.f32 %v1109_v36, %v597_v8 }
 0x13c   :  { %v1104_v19 = vpop.xlane.xlu1 %505 }
 0x140   :  { %v1107_v33 = vpop.xlane.xlu0 %508  ;;  %v410_v34 = vpop.xlane.xlu1 %409 }
 0x141   :  { %756 = vlog2.f32 %v410_v34 }
 0x142   :  { %758 = vpow2.f32 %v589_v20 }
 0x143   :  { %760 = vpow2.f32 %v591_v32 }
 0x144   :  { %v413_v39 = vpop.xlane.xlu0 %412  ;;  %v419_v44 = vpop.xlane.xlu1 %418 }
 0x145   :  { %762 = vlog2.f32 %v413_v39 }
 0x146   :  { %764 = vpow2.f32 %v565_v37  ;;  %v608_v37 = vand.u32 2147483647, %v1111_v38 }
 0x147   :  { %766 = vlog2.f32 %v593_v46 }
 0x148   :  { %v416_v50 = vpop.xlane.xlu0 %415  ;;  %v425_v51 = vpop.xlane.xlu1 %424  ;;  %vm1163_vm0 = vcmp.lt.f32.partialorder %v608_v37, 0.0004427343 }
 0x149   :  { %768 = vlog2.f32 %v416_v50  ;;  %v257_v50 = vld [vmem:[%s1261_s0 + $0x88] sm:$0xff] }
 0x14a   :  { %770 = vlog2.f32 %v419_v44  ;;  %v255_v44 = vld [vmem:[%s1261_s0 + $0x78] sm:$0xff] }
 0x14b   :  { %v757_v54 = vpop.eup %756  ;;  %772 = vlog2.f32 %v602_v49 }
 0x14c   :  { %v1118_v55 = vpop.eup %758  ;;  %v422_v56 = vpop.xlane.xlu0 %421  ;;  %774 = vpow2.f32 %v569_v52  ;;  %v433_v58 = vmul.f32 0.6931472, %v757_v54  ;;  %v1157_v52 = vmul.f32 %v1111_v38, %v606_v14  ;;  %v575_v14 = vmax.f32 %v1095_v10, 0.0 }
 0x14d   :  { %v431_v11 = vpop.xlane.xlu1 %430  ;;  %v1120_v57 = vpop.eup %760  ;;  %776 = vlog2.f32 %v422_v56  ;;  %v611_v61 = vadd.f32 1.0, %v1118_v55  ;;  %v614_v9 = vmul.f32 -0.5, %v1118_v55  ;;  %v573_v56 = vmax.f32 %v1083_v5, 0.0 }
 0x14e   :  { %778 = vlog2.f32 %v425_v51  ;;  %v620_v31 = vadd.f32 1.0, %v1120_v57  ;;  %v448_v0 = vadd.f32 %v433_v58, %v992_v21 }
 0x14f   :  { %v763_v7 = vpop.eup %762  ;;  %780 = vpow2.f32 %v567_v2  ;;  %v615_v46 = vadd.f32 1.0, %v614_v9  ;;  %v258_v9 = vld [vmem:[%s1261_s0 + $0x90] sm:$0xff] }
 0x150   :  { %v435_v62 = vmul.f32 0.6931472, %v763_v7  ;;  %782 = vlog2.f32 %v431_v11  ;;  %v428_v63 = vpop.xlane.xlu0 %427  ;;  %v1126_v1 = vpop.eup %764  ;;  %v528_v32 = vsub.f32 %v448_v0, %v1104_v19  ;;  %v617_v0 = vand.u32 2147483647, %v1118_v55 }
 0x151   :  { %v303_v15 = vpop.xlane.xlu1 %302  ;;  %784 = vlog2.f32 %v428_v63  ;;  %v767_v25 = vpop.eup %766 }
 0x152   :  { %v449_v6 = vadd.f32 %v435_v62, %v996_v23  ;;  %786 = vpow2.f32 %v571_v59  ;;  %v1137_v34 = vmul.f32 0.6931472, %v767_v25  ;;  %v536_v59 = vmul.f32 %v528_v32, %v255_v44 }
 0x153   :  { %v769_v41 = vpop.eup %768  ;;  %788 = vlog2.f32 %v611_v61  ;;  %v1173_v62 = vmul.f32 %v1118_v55, %v615_v46  ;;  %vm1196_vm1 = vcmp.lt.f32.partialorder %v617_v0, 0.0004427343 }
 0x154   :  { %v771_v16 = vpop.eup %770  ;;  %v529_v21 = vsub.f32 %v449_v6, %v1107_v33  ;;  %v437_v18 = vmul.f32 0.6931472, %v769_v41  ;;  %v300_v20 = vpop.xlane.xlu0 %299  ;;  %790 = vlog2.f32 %v620_v31  ;;  %v601_v5 = vsel %vm1152_vm15, %v1147_v45, %v1137_v34 }
 0x155   :  { %v512_v23 = vpop.xlane.xlu1 %511  ;;  %v773_v29 = vpop.eup %772  ;;  %792 = vlog2.f32 %v300_v20  ;;  %v439_v49 = vmul.f32 0.6931472, %v771_v16  ;;  %v545_v16 = vsel %vm544_vm14, %v536_v59, 0.0  ;;  %v626_v34 = vand.u32 2147483647, %v1120_v57 }
 0x156   :  { %v1140_v39 = vpop.eup %774  ;;  %794 = vlog2.f32 %v303_v15  ;;  %v450_v33 = vadd.f32 %v437_v18, %v994_v22  ;;  %v537_v19 = vmul.f32 %v529_v21, %v256_v17  ;;  %v604_v11 = vmul.f32 0.6931472, %v773_v29 }
 0x157   :  { %v777_v47 = vpop.eup %776  ;;  %v451_v31 = vadd.f32 %v439_v49, %v998_v26  ;;  %v623_v18 = vmul.f32 -0.5, %v1120_v57  ;;  %vm1222_vm2 = vcmp.lt.f32.partialorder %v626_v34, 0.0004427343 }
 0x158   :  { %v779_v53 = vpop.eup %778  ;;  %v441_v22 = vmul.f32 0.6931472, %v777_v47  ;;  %v530_v54 = vsub.f32 %v450_v33, %v512_v23  ;;  %v306_v36 = vpop.xlane.xlu0 %305  ;;  %v546_v40 = vsel %vm544_vm14, %v537_v19, 0.0  ;;  %v610_v26 = vsel %vm1163_vm0, %v1157_v52, %v604_v11 }
 0x159   :  { %v518_v2 = vpop.xlane.xlu1 %517  ;;  %v1160_v58 = vpop.eup %780  ;;  %796 = vlog2.f32 %v306_v36  ;;  %v443_v15 = vmul.f32 0.6931472, %v779_v53  ;;  %v547_v29 = vadd.f32 %v546_v40, %v545_v16  ;;  %v624_v36 = vadd.f32 1.0, %v623_v18  ;;  %v245_v18 = vld [vmem:[%s1261_s0 + $0x28] sm:$0xff] }
 0x15a   :  { %v783_v38 = vpop.eup %782  ;;  %v538_v24 = vmul.f32 %v530_v54, %v257_v50  ;;  %v452_v61 = vadd.f32 %v441_v22, %v1000_v27  ;;  %v259_v27 = vld [vmem:[%s1261_s0 + $0x98] sm:$0xff]  ;;  %v261_v50 = vld [vmem:[%s1261_s0 + $0xa8] sm:$0xff] }
 0x15b   :  { %v785_v63 = vpop.eup %784  ;;  %v447_v23 = vmul.f32 0.6931472, %v783_v38  ;;  %v453_v45 = vadd.f32 %v443_v15, %v1002_v28  ;;  %v630_v38 = vadd.f32 %v610_v26, %v574_v60 }
 0x15c   :  { %v1178_v25 = vpop.eup %786  ;;  %v445_v6 = vmul.f32 0.6931472, %v785_v63  ;;  %v532_v8 = vsub.f32 %v452_v61, %v518_v2  ;;  %v515_v41 = vpop.xlane.xlu0 %514  ;;  %v548_v17 = vsel %vm544_vm14, %v538_v24, 0.0  ;;  %v629_v2 = vadd.f32 %v601_v5, %v573_v56 }
 0x15d   :  { %v524_v3 = vpop.xlane.xlu1 %523  ;;  %v789_v55 = vpop.eup %788  ;;  %v531_v21 = vsub.f32 %v451_v31, %v515_v41  ;;  %v549_v49 = vadd.f32 %v548_v17, %v547_v29  ;;  %v455_v7 = vadd.f32 %v447_v23, %v1012_v35  ;;  %v243_v41 = vld [vmem:[%s1261_s0 + $0x18] sm:$0xff] }
 0x15e   :  { %v791_v20 = vpop.eup %790  ;;  %v454_v32 = vadd.f32 %v445_v6, %v1006_v30  ;;  %v540_v44 = vmul.f32 %v532_v8, %v259_v27  ;;  %v260_v30 = vld [vmem:[%s1261_s0 + $0xa0] sm:$0xff]  ;;  %v613_v53 = vmul.f32 0.6931472, %v789_v55  ;;  %v262_v6 = vld [vmem:[%s1261_s0 + $0xb0] sm:$0xff]  ;;  %v625_v8 = vmul.f32 %v1120_v57, %v624_v36 }
 0x15f   :  { %v793_v37 = vpop.eup %792  ;;  %v539_v33 = vmul.f32 %v531_v21, %v258_v9  ;;  %v622_v56 = vmul.f32 0.6931472, %v791_v20  ;;  %v576_v21 = vmax.f32 %v1100_v12, 0.0 }
 0x160   :  { %v795_v47 = vpop.eup %794  ;;  %v308_v19 = vmul.f32 0.6931472, %v793_v37  ;;  %v534_v51 = vsub.f32 %v454_v32, %v524_v3  ;;  %v521_v52 = vpop.xlane.xlu0 %520  ;;  %v552_v63 = vsel %vm544_vm14, %v540_v44, 0.0  ;;  %v633_v32 = vadd.f32 %v630_v38, %v629_v2  ;;  %v246_v44 = vld [vmem:[%s1261_s0 + $0x30] sm:$0xff] }
 0x161   :  { %v550_v28 = vsel %vm544_vm14, %v539_v33, 0.0  ;;  %v533_v22 = vsub.f32 %v453_v45, %v521_v52  ;;  %v338_v54 = vpop.xlane.xlu1 %337  ;;  %v310_v61 = vmul.f32 0.6931472, %v795_v47  ;;  %v628_v12 = vsel %vm1222_vm2, %v625_v8, %v622_v56 }
 0x162   :  { %v551_v11 = vadd.f32 %v550_v28, %v549_v49  ;;  %v313_v59 = vadd.f32 %v308_v19, %v1018_v42  ;;  %v542_v15 = vmul.f32 %v534_v51, %v261_v50  ;;  %v619_v42 = vsel %vm1196_vm1, %v1173_v62, %v613_v53 }
 0x163   :  { %v797_v24 = vpop.eup %796  ;;  %v541_v40 = vmul.f32 %v533_v22, %v260_v30  ;;  %v314_v17 = vadd.f32 %v310_v61, %v1020_v43  ;;  %v631_v29 = vadd.f32 %v619_v42, %v575_v14  ;;  %v632_v47 = vadd.f32 %v628_v12, %v576_v21 }
 0x164   :  { %v312_v31 = vmul.f32 0.6931472, %v797_v24  ;;  %v553_v0 = vadd.f32 %v552_v63, %v551_v11  ;;  %v527_v27 = vpop.xlane.xlu0 %526  ;;  %v345_v60 = vsub.f32 %v313_v59, %v338_v54  ;;  %v556_v62 = vsel %vm544_vm14, %v542_v15, 0.0 }
 0x165   :  { %v554_v35 = vsel %vm544_vm14, %v541_v40, 0.0  ;;  %v535_v5 = vsub.f32 %v455_v7, %v527_v27  ;;  %v344_v16 = vpop.xlane.xlu1 %343  ;;  %v634_v49 = vadd.f32 %v633_v32, %v631_v29  ;;  %v645_v54 = vshrl.u32 %v123_v4, 7 }
 0x166   :  { %v555_v9 = vadd.f32 %v554_v35, %v553_v0  ;;  %v315_v3 = vadd.f32 %v312_v31, %v1026_v48  ;;  %v244_v48 = vld [vmem:[%s1261_s0 + $0x20] sm:$0xff]  ;;  %v348_v34 = vmul.f32 %v345_v60, %v243_v41  ;;  %s823_s0 = smov [#allocation22]  }
 0x167   :  { %v543_v55 = vmul.f32 %v535_v5, %v262_v6  ;;  %v635_v30 = vadd.f32 %v634_v49, %v632_v47  ;;  %vm646_vm3 = vcmp.eq.s32.totalorder %v645_v54, %v904_v13  ;;  %s669_s6 = sshll.u32 %s823_s0, 4  ;;  %s670_s6 = int_to_ptr.vmem [resolvable:$true] %s669_s6 }
 0x168   :  { %v557_v57 = vadd.f32 %v556_v62, %v555_v9  ;;  %v347_v20 = vsub.f32 %v315_v3, %v344_v16  ;;  %v341_v23 = vpop.xlane.xlu0 %340  ;;  %v636_v19 = vmul.f32 %v1126_v1, %v348_v34  ;;  %s798_s20 = scalar_lea.vmem %s670_s6, 16  ;;  %s802_s21 = scalar_lea.vmem %s670_s6, 32 }
 0x169   :  { %v558_v43 = vsel %vm544_vm14, %v543_v55, 0.0  ;;  %v346_v37 = vsub.f32 %v314_v17, %v341_v23  ;;  %p799_p0 = scmp.ne.s32.totalorder %s670_s6, %s798_s20  ;;  %p803_p1 = scmp.lt.s32.totalorder %s670_s6, %s670_s6 }
 0x16a   :  { %v559_v33 = vadd.f32 %v558_v43, %v557_v57  ;;  %v350_v45 = vmul.f32 %v347_v20, %v245_v18  ;;  %p804_p2 = scmp.lt.s32.totalorder %s802_s21, %s798_s20 }
 0x16b   :  { %v349_v46 = vmul.f32 %v346_v37, %v244_v48 }
 0x16c   :  { %v560_v10 = vmul.f32 %v559_v33, %v246_v44  ;;  %v639_v50 = vmul.f32 %v1140_v39, %v350_v45  ;;  %p805_p3 = por %p804_p2, %p803_p1 }
 0x16d   :  { %v637_v14 = vmul.f32 %v1160_v58, %v349_v46 }
 0x16e   :  { %v641_v53 = vmul.f32 %v1178_v25, %v560_v10  ;;  %p806_p4 = pnand %p805_p3, %p799_p0 }
 0x16f   :  { %v638_v51 = vadd.f32 %v637_v14, %v636_v19 }
 0x171   :  { %v640_v52 = vadd.f32 %v639_v50, %v638_v51 }
 0x173   :  { %v642_v28 = vadd.f32 %v641_v53, %v640_v52 }
 0x175   :  { %v643_v22 = vadd.f32 %v642_v28, %v635_v30 }
 0x177   :  { %649 = vperm.xlu0 %727, %v643_v22  }
 0x1f6   :  { %v650_v1 = vpop.permute.xlu0 %649 }
 0x1f7   :  { %v652_v36 = vsel %vm646_vm3, %v650_v1, 0.0 }
 0x1f8   :  { %v654_v2 = vsel %vm653_vm4, %v652_v36, 0.0 }
 0x1f9   :  { %v655_v58 = vrot.slane %v654_v2, 4 }
 0x1fb   :  { %v656_v11 = vadd.f32 %v655_v58, %v654_v2 }
 0x1fd   :  { %v657_v59 = vrot.slane %v656_v11, 2 }
 0x1ff   :  { %v658_v39 = vadd.f32 %v657_v59, %v656_v11 }
 0x201   :  { %v659_v7 = vrot.slane %v658_v39, 1 }
 0x203   :  { %v660_v25 = vadd.f32 %v659_v7, %v658_v39 }
 0x205   :  { %662 = vst.msk [vmem:[#allocation22] sm:$0x1] %vm661_vm5, %v660_v25 }
 0x206   :  { %809 = shalt.err (!%p806_p4)
}
 0x207   :  { %s810_s4 = scalar_lea.hbm %s1268_s7, 16 }
 0x208   :  { %p811_p5 = scmp.ne.s32.totalorder %s1268_s7, %s810_s4  ;;  %p814_p6 = scmp.lt.u32.totalorder %s810_s4, %s1268_s7 }
 0x20a   :  { %p816_p7 = pnand %p814_p6, %p811_p5 }
 0x20c   :  { %819 = shalt.err (!%p816_p7)
}
 0x20d   :  { %672 = dma.vmem_to_hbm [thread:$0]  %s670_s6, 16, %s1268_s7, [#allocation23]  }
 0x20e   :  { %820 = dma.done.wait [#allocation23], 16  }
 0x20f   :  { %821 = vsyncadd [#allocation23], 4294967280 }
 0x210   :  { %676 = vsyncpa [#allocation23], 1 }

</bundles_post_ra>
